<compile_context>
chip_gen: v7x
topology: tpu7x:2x2x1
jax: 0.10.0
libtpu: 0.0.40
codegen_flags: <defaults>
</compile_context>

<pallas_src>
import jax
import jax.numpy as jnp
from jax.experimental import pallas as pl
from jax.experimental.pallas import tpu as pltpu

IN_FEATURES = 64
OUT_FEATURES = 64
OUT_PAD = 128  # lane-dense output slab; sliced back to 64 in the wrapper


def _round_up(x, m):
    return (x + m - 1) // m * m


def mlpff_kernel(x_ref,
                 w1_ref, b1_ref,
                 w2_ref, b2_ref,
                 w3_ref, b3_ref,
                 w4_ref, b4_ref,
                 o_ref):
    cdt = w1_ref.dtype  # compute dtype fed to the MXU (bf16 or f32)

    # line1 + ReLU
    h = jnp.dot(x_ref[...], w1_ref[...], preferred_element_type=jnp.float32)
    h = jnp.maximum(h + b1_ref[...], 0.0).astype(cdt)

    # line2 + ReLU
    h = jnp.dot(h, w2_ref[...], preferred_element_type=jnp.float32)
    h = jnp.maximum(h + b2_ref[...], 0.0).astype(cdt)

    # line3 + ReLU
    h = jnp.dot(h, w3_ref[...], preferred_element_type=jnp.float32)
    h = jnp.maximum(h + b3_ref[...], 0.0).astype(cdt)

    # fc1 (no activation) -- lane-dense 128-wide store
    out = jnp.dot(h, w4_ref[...], preferred_element_type=jnp.float32) + b4_ref[...]
    o_ref[...] = out.astype(o_ref.dtype)


def mlpff_forward(x, params, *, tile_b=512, use_bf16=True):
    """x: [B, 64] float32. params: dict of transposed ([in, out]) weights / (1, out) biases."""
    B, F_in = x.shape
    assert F_in == IN_FEATURES
    compute_dtype = jnp.bfloat16 if use_bf16 else jnp.float32

    # --- pad hidden / output feature dims to 128-lane multiples (exact: zero pad) ---
    n_hidden = params["w1"].shape[1]
    nh_pad = _round_up(max(n_hidden, 128), 128)

    def pad2d(a, rows, cols):
        return jnp.pad(a, ((0, rows - a.shape[0]), (0, cols - a.shape[1])))

    w1 = pad2d(params["w1"], IN_FEATURES, nh_pad).astype(compute_dtype)
    w2 = pad2d(params["w2"], nh_pad, nh_pad).astype(compute_dtype)
    w3 = pad2d(params["w3"], nh_pad, nh_pad).astype(compute_dtype)
    w4 = pad2d(params["w4"], nh_pad, OUT_PAD).astype(compute_dtype)
    b1 = pad2d(params["b1"], 1, nh_pad).astype(jnp.float32)
    b2 = pad2d(params["b2"], 1, nh_pad).astype(jnp.float32)
    b3 = pad2d(params["b3"], 1, nh_pad).astype(jnp.float32)
    b4 = pad2d(params["b4"], 1, OUT_PAD).astype(jnp.float32)

    # --- batch tiling: big tiles, but keep >= 2 grid steps for megacore ---
    tile_b = int(min(tile_b, max(8, _round_up(pl.cdiv(B, 2), 8))))
    B_pad = _round_up(B, tile_b)

    x_in = x.astype(compute_dtype)
    if B_pad != B:
        x_in = jnp.pad(x_in, ((0, B_pad - B), (0, 0)))

    grid = (B_pad // tile_b,)

    def batch_map(i):
        return (i, 0)

    def full_map(i):
        return (0, 0)

    in_specs = [
        pl.BlockSpec((tile_b, IN_FEATURES), batch_map),     # x
        pl.BlockSpec((IN_FEATURES, nh_pad), full_map),      # w1 [in, out]
        pl.BlockSpec((1, nh_pad), full_map),                # b1
        pl.BlockSpec((nh_pad, nh_pad), full_map),           # w2
        pl.BlockSpec((1, nh_pad), full_map),                # b2
        pl.BlockSpec((nh_pad, nh_pad), full_map),           # w3
        pl.BlockSpec((1, nh_pad), full_map),                # b3
        pl.BlockSpec((nh_pad, OUT_PAD), full_map),          # w4 (lane-padded out)
        pl.BlockSpec((1, OUT_PAD), full_map),               # b4
    ]
    out_spec = pl.BlockSpec((tile_b, OUT_PAD), batch_map)

    out = pl.pallas_call(
        mlpff_kernel,
        out_shape=jax.ShapeDtypeStruct((B_pad, OUT_PAD), jnp.float32),
        grid=grid,
        in_specs=in_specs,
        out_specs=out_spec,
        compiler_params=pltpu.CompilerParams(
            dimension_semantics=("parallel",)),
    )(x_in, w1, b1, w2, b2, w3, b3, w4, b4)

    return out[:B, :OUT_FEATURES]


def init_mlpff_params(key, n_hidden):
    """Deterministic init mimicking nn.Linear shapes.

    PyTorch weight shape is [out, in]; we store the transpose [in, out] so the
    kernel computes x @ W + b. Biases are kept 2D ([1, out]) for TPU layout.
    """
    ks = jax.random.split(key, 8)

    def uniform(k, shape, fan_in):
        bound = 1.0 / jnp.sqrt(fan_in)
        return jax.random.uniform(k, shape, jnp.float32, -bound, bound)

    return {
        "w1": uniform(ks[0], (IN_FEATURES, n_hidden), IN_FEATURES),
        "b1": uniform(ks[1], (1, n_hidden), IN_FEATURES),
        "w2": uniform(ks[2], (n_hidden, n_hidden), n_hidden),
        "b2": uniform(ks[3], (1, n_hidden), n_hidden),
        "w3": uniform(ks[4], (n_hidden, n_hidden), n_hidden),
        "b3": uniform(ks[5], (1, n_hidden), n_hidden),
        "w4": uniform(ks[6], (n_hidden, OUT_FEATURES), n_hidden),
        "b4": uniform(ks[7], (1, OUT_FEATURES), n_hidden),
    }


def mlpff_reference(x, params):
    """Pure-JAX f32 reference of the PyTorch forward."""
    h = jnp.maximum(x @ params["w1"] + params["b1"], 0.0)
    h = jnp.maximum(h @ params["w2"] + params["b2"], 0.0)
    h = jnp.maximum(h @ params["w3"] + params["b3"], 0.0)
    return h @ params["w4"] + params["b4"]


if __name__ == "__main__":
    key = jax.random.PRNGKey(0)
    k_param, k_x = jax.random.split(key)

    n_hidden = 32
    batch = 16

    params = init_mlpff_params(k_param, n_hidden)
    x = jax.random.normal(k_x, (batch, IN_FEATURES), jnp.float32)

    ref = mlpff_reference(x, params)

    # f32 path: tight tolerance check of the padded/tiled kernel.
    out_f32 = jax.block_until_ready(mlpff_forward(x, params, use_bf16=False))
    assert out_f32.shape == (batch, OUT_FEATURES)
    assert jnp.allclose(out_f32, ref, atol=1e-5, rtol=1e-5), "f32 mismatch vs reference"

    # bf16 path (default, fast on MXU): loose tolerance.
    out_bf16 = jax.block_until_ready(mlpff_forward(x, params, use_bf16=True))
    assert out_bf16.shape == (batch, OUT_FEATURES)
    assert jnp.allclose(out_bf16, ref, atol=5e-2, rtol=5e-2), "bf16 mismatch vs reference"

    print("KERNEL_OK")
</pallas_src>

<mosaic_0001>
module attributes {stable_mosaic.version = 11 : i64} {
  func.func @mlpff_kernel(%arg0: i32, %arg1: memref<8x64xf32, #tpu.memory_space<vmem>>, %arg2: memref<64x128xf32, #tpu.memory_space<vmem>>, %arg3: memref<1x128xf32, #tpu.memory_space<vmem>>, %arg4: memref<128x128xf32, #tpu.memory_space<vmem>>, %arg5: memref<1x128xf32, #tpu.memory_space<vmem>>, %arg6: memref<128x128xf32, #tpu.memory_space<vmem>>, %arg7: memref<1x128xf32, #tpu.memory_space<vmem>>, %arg8: memref<128x128xf32, #tpu.memory_space<vmem>>, %arg9: memref<1x128xf32, #tpu.memory_space<vmem>>, %arg10: memref<8x128xf32, #tpu.memory_space<vmem>>) attributes {dimension_semantics = [#tpu.dimension_semantics<parallel>], iteration_bounds = array<i64: 2>, scalar_prefetch = 0 : i64, scratch_operands = 0 : i64, tpu.core_type = #tpu.core_type<tc>, window_params = [{transform_indices = @transform_0, window_bounds = array<i64: 8, 64>}, {pipeline_mode = #tpu.pipeline_mode<synchronous>, transform_indices = @transform_1, window_bounds = array<i64: 64, 128>}, {pipeline_mode = #tpu.pipeline_mode<synchronous>, transform_indices = @transform_2, window_bounds = array<i64: 1, 128>}, {pipeline_mode = #tpu.pipeline_mode<synchronous>, transform_indices = @transform_3, window_bounds = array<i64: 128, 128>}, {pipeline_mode = #tpu.pipeline_mode<synchronous>, transform_indices = @transform_4, window_bounds = array<i64: 1, 128>}, {pipeline_mode = #tpu.pipeline_mode<synchronous>, transform_indices = @transform_5, window_bounds = array<i64: 128, 128>}, {pipeline_mode = #tpu.pipeline_mode<synchronous>, transform_indices = @transform_6, window_bounds = array<i64: 1, 128>}, {pipeline_mode = #tpu.pipeline_mode<synchronous>, transform_indices = @transform_7, window_bounds = array<i64: 128, 128>}, {pipeline_mode = #tpu.pipeline_mode<synchronous>, transform_indices = @transform_8, window_bounds = array<i64: 1, 128>}, {transform_indices = @transform_9, window_bounds = array<i64: 8, 128>}]} {
    %c0 = arith.constant 0 : index
    %c0_0 = arith.constant 0 : index
    %0 = vector.load %arg1[%c0, %c0_0] : memref<8x64xf32, #tpu.memory_space<vmem>>, vector<8x64xf32>
    %c0_1 = arith.constant 0 : index
    %c0_2 = arith.constant 0 : index
    %1 = vector.load %arg2[%c0_1, %c0_2] : memref<64x128xf32, #tpu.memory_space<vmem>>, vector<64x128xf32>
    %cst = arith.constant dense<0.000000e+00> : vector<8x128xf32>
    %2 = tpu.matmul %0, %1, %cst {dimension_numbers = #tpu.dot_dimension_numbers<[1], [0], [0], [1], [0, 0, 1, 1], [], []>} : vector<8x64xf32>, vector<64x128xf32>, vector<8x128xf32> -> vector<8x128xf32>
    %c0_3 = arith.constant 0 : index
    %c0_4 = arith.constant 0 : index
    %3 = vector.load %arg3[%c0_3, %c0_4] : memref<1x128xf32, #tpu.memory_space<vmem>>, vector<1x128xf32>
    %4 = vector.broadcast %3 : vector<1x128xf32> to vector<8x128xf32>
    %5 = arith.addf %2, %4 : vector<8x128xf32>
    %cst_5 = arith.constant 0.000000e+00 : f32
    %6 = vector.broadcast %cst_5 : f32 to vector<8x128xf32>
    %7 = arith.maximumf %5, %6 : vector<8x128xf32>
    %c0_6 = arith.constant 0 : index
    %c0_7 = arith.constant 0 : index
    %8 = vector.load %arg4[%c0_6, %c0_7] : memref<128x128xf32, #tpu.memory_space<vmem>>, vector<128x128xf32>
    %cst_8 = arith.constant dense<0.000000e+00> : vector<8x128xf32>
    %9 = tpu.matmul %7, %8, %cst_8 {dimension_numbers = #tpu.dot_dimension_numbers<[1], [0], [0], [1], [0, 0, 1, 1], [], []>} : vector<8x128xf32>, vector<128x128xf32>, vector<8x128xf32> -> vector<8x128xf32>
    %c0_9 = arith.constant 0 : index
    %c0_10 = arith.constant 0 : index
    %10 = vector.load %arg5[%c0_9, %c0_10] : memref<1x128xf32, #tpu.memory_space<vmem>>, vector<1x128xf32>
    %11 = vector.broadcast %10 : vector<1x128xf32> to vector<8x128xf32>
    %12 = arith.addf %9, %11 : vector<8x128xf32>
    %cst_11 = arith.constant 0.000000e+00 : f32
    %13 = vector.broadcast %cst_11 : f32 to vector<8x128xf32>
    %14 = arith.maximumf %12, %13 : vector<8x128xf32>
    %c0_12 = arith.constant 0 : index
    %c0_13 = arith.constant 0 : index
    %15 = vector.load %arg6[%c0_12, %c0_13] : memref<128x128xf32, #tpu.memory_space<vmem>>, vector<128x128xf32>
    %cst_14 = arith.constant dense<0.000000e+00> : vector<8x128xf32>
    %16 = tpu.matmul %14, %15, %cst_14 {dimension_numbers = #tpu.dot_dimension_numbers<[1], [0], [0], [1], [0, 0, 1, 1], [], []>} : vector<8x128xf32>, vector<128x128xf32>, vector<8x128xf32> -> vector<8x128xf32>
    %c0_15 = arith.constant 0 : index
    %c0_16 = arith.constant 0 : index
    %17 = vector.load %arg7[%c0_15, %c0_16] : memref<1x128xf32, #tpu.memory_space<vmem>>, vector<1x128xf32>
    %18 = vector.broadcast %17 : vector<1x128xf32> to vector<8x128xf32>
    %19 = arith.addf %16, %18 : vector<8x128xf32>
    %cst_17 = arith.constant 0.000000e+00 : f32
    %20 = vector.broadcast %cst_17 : f32 to vector<8x128xf32>
    %21 = arith.maximumf %19, %20 : vector<8x128xf32>
    %c0_18 = arith.constant 0 : index
    %c0_19 = arith.constant 0 : index
    %22 = vector.load %arg8[%c0_18, %c0_19] : memref<128x128xf32, #tpu.memory_space<vmem>>, vector<128x128xf32>
    %cst_20 = arith.constant dense<0.000000e+00> : vector<8x128xf32>
    %23 = tpu.matmul %21, %22, %cst_20 {dimension_numbers = #tpu.dot_dimension_numbers<[1], [0], [0], [1], [0, 0, 1, 1], [], []>} : vector<8x128xf32>, vector<128x128xf32>, vector<8x128xf32> -> vector<8x128xf32>
    %c0_21 = arith.constant 0 : index
    %c0_22 = arith.constant 0 : index
    %24 = vector.load %arg9[%c0_21, %c0_22] : memref<1x128xf32, #tpu.memory_space<vmem>>, vector<1x128xf32>
    %25 = vector.broadcast %24 : vector<1x128xf32> to vector<8x128xf32>
    %26 = arith.addf %23, %25 : vector<8x128xf32>
    %c0_23 = arith.constant 0 : index
    %c0_24 = arith.constant 0 : index
    %27 = vector.load %arg10[%c0_23, %c0_24] : memref<8x128xf32, #tpu.memory_space<vmem>>, vector<8x128xf32>
    tpu.vector_store %arg10[%c0_23, %c0_24], %26 {strides = array<i32>} : memref<8x128xf32, #tpu.memory_space<vmem>>, vector<8x128xf32>,
    return
  }
  func.func @transform_0(%arg0: i32) -> (i32, i32) {
    %c0_i32 = arith.constant 0 : i32
    %c0_i32_0 = arith.constant 0 : i32
    return %arg0, %c0_i32 : i32, i32
  }
  func.func @transform_1(%arg0: i32) -> (i32, i32) {
    %c0_i32 = arith.constant 0 : i32
    %c0_i32_0 = arith.constant 0 : i32
    %c0_i32_1 = arith.constant 0 : i32
    return %c0_i32, %c0_i32_0 : i32, i32
  }
  func.func @transform_2(%arg0: i32) -> (i32, i32) {
    %c0_i32 = arith.constant 0 : i32
    %c0_i32_0 = arith.constant 0 : i32
    %c0_i32_1 = arith.constant 0 : i32
    return %c0_i32, %c0_i32_0 : i32, i32
  }
  func.func @transform_3(%arg0: i32) -> (i32, i32) {
    %c0_i32 = arith.constant 0 : i32
    %c0_i32_0 = arith.constant 0 : i32
    %c0_i32_1 = arith.constant 0 : i32
    return %c0_i32, %c0_i32_0 : i32, i32
  }
  func.func @transform_4(%arg0: i32) -> (i32, i32) {
    %c0_i32 = arith.constant 0 : i32
    %c0_i32_0 = arith.constant 0 : i32
    %c0_i32_1 = arith.constant 0 : i32
    return %c0_i32, %c0_i32_0 : i32, i32
  }
  func.func @transform_5(%arg0: i32) -> (i32, i32) {
    %c0_i32 = arith.constant 0 : i32
    %c0_i32_0 = arith.constant 0 : i32
    %c0_i32_1 = arith.constant 0 : i32
    return %c0_i32, %c0_i32_0 : i32, i32
  }
  func.func @transform_6(%arg0: i32) -> (i32, i32) {
    %c0_i32 = arith.constant 0 : i32
    %c0_i32_0 = arith.constant 0 : i32
    %c0_i32_1 = arith.constant 0 : i32
    return %c0_i32, %c0_i32_0 : i32, i32
  }
  func.func @transform_7(%arg0: i32) -> (i32, i32) {
    %c0_i32 = arith.constant 0 : i32
    %c0_i32_0 = arith.constant 0 : i32
    %c0_i32_1 = arith.constant 0 : i32
    return %c0_i32, %c0_i32_0 : i32, i32
  }
  func.func @transform_8(%arg0: i32) -> (i32, i32) {
    %c0_i32 = arith.constant 0 : i32
    %c0_i32_0 = arith.constant 0 : i32
    %c0_i32_1 = arith.constant 0 : i32
    return %c0_i32, %c0_i32_0 : i32, i32
  }
  func.func @transform_9(%arg0: i32) -> (i32, i32) {
    %c0_i32 = arith.constant 0 : i32
    %c0_i32_0 = arith.constant 0 : i32
    return %arg0, %c0_i32 : i32, i32
  }
}

</mosaic_0001>

<bundles_post_ra>
// kernel: tpu_custom_call.1
= control target key start
LH: loop header
LB: loop body
LE: loop exit
PB: predicated region body
PF: predicated region fallthrough
CT: control target
= control target key end

     0   :  { %s1912_s0 = inlined_call_operand.hbm [shape: f32[16,64], index: 0, kind: input, shape index: {}]   ;;  %s1913_s1 = inlined_call_operand.hbm [shape: f32[64,128], index: 1, kind: input, shape index: {}]   ;;  %s1914_s2 = inlined_call_operand.vmem [shape: f32[1,128], index: 2, kind: input, shape index: {}]   ;;  %s1915_s3 = inlined_call_operand.hbm [shape: f32[128,128], index: 3, kind: input, shape index: {}]   ;;  %s1916_s4 = inlined_call_operand.vmem [shape: f32[1,128], index: 4, kind: input, shape index: {}]   ;;  %s1917_s5 = inlined_call_operand.hbm [shape: f32[128,128], index: 5, kind: input, shape index: {}]   ;;  %s1918_s6 = inlined_call_operand.vmem [shape: f32[1,128], index: 6, kind: input, shape index: {}]   ;;  %s1919_s7 = inlined_call_operand.hbm [shape: f32[128,128], index: 7, kind: input, shape index: {}]   ;;  %s1920_s8 = inlined_call_operand.vmem [shape: f32[1,128], index: 8, kind: input, shape index: {}]   ;;  %s1921_s9 = inlined_call_operand.hbm [shape: f32[16,128], index: 9, kind: output, shape index: {}]  }
   0x1   :  { %1926 = sst [smem:[#allocation16_spill]] %s1913_s1 }
   0x2   :  { %1927 = sst [smem:[#allocation17_spill]] %s1921_s9 }
   0x3   :  { %14 = vsyncpa [#allocation3], 0 }
   0x4   :  { %16 = vsyncpa [#allocation3 + $0x1], 0 }
   0x5   :  { %17 = vsyncpa [#allocation6], 0 }
   0x6   :  { %18 = vsyncpa [#allocation9], 0 }
   0x7   :  { %19 = vsyncpa [#allocation4], 0 }
   0x8   :  { %21 = vsyncpa [#allocation4 + $0x1], 0  ;;  %s1565_s30 = smov 0   ;;  %s1567_s10 = smov 0  }
   0x9   :  { %s1569_s11 = smov 0   ;;  %s1571_s12 = smov 0  }
   0xa LB: > { %s1504_s13 = smov [#allocation5]   ;;  %s1586_s15 = sadd.s32 4294967295, %s1502_s12   ;;  %s1502_s12 = sphi %s1571_s12, %s1950_s12   ;;  %s1498_s11 = sphi %s1569_s11, %s1949_s11   ;;  %s1494_s10 = sphi %s1567_s10, %s1948_s10   ;;  %s1490_s30 = sphi %s1565_s30, %s1947_s30  }
   0xb   : > { %s264_s14 = sshll.u32 %s1504_s13, 4  ;;  %p902_p0 = scmp.ge.s32.totalorder %s1502_s12, 1  ;;  %s1591_s14 = int_to_ptr.vmem [resolvable:$true] %s264_s14 }
   0xc   : > { %p1923_p1 = scmp.eq.s32.totalorder %s1586_s15, 0  ;;  %p252_p2 = scmp.lt.s32.totalorder %s1502_s12, 3 }
   0xd   : > { %s1505_s17 = smov [#allocation8]   ;;  %s1506_s20 = smov [#allocation7]  }
   0xe   : > { %p1593_p3 = pnand %p902_p0, %p252_p2  ;;  %s296_s18 = sshll.u32 %s1505_s17, 4  ;;  %s1606_s18 = int_to_ptr.vmem [resolvable:$true] %s296_s18 }
   0xf   : > { %s280_s21 = sshll.u32 %s1506_s20, 4  ;;  %s1930_s1 = sld [smem:[#allocation16_spill]]  ;;  %s1608_s21 = int_to_ptr.vmem [resolvable:$true] %s280_s21 }
  0x10   : > { %s1928_s16 = scalar_select %p1593_p3, 1, 0 }
  0x11   : > { %p1214_p5 = pneg %p1593_p3 }
  0x13   : > { %p1602_p6 = pnand %p1214_p5, %p1923_p1 }
  0x15   : > { %s1286_s24 = scalar_lea.hbm %s1930_s1, 1024  ;;  %p1618_p8 = pneg %p1602_p6 }
  0x16   : > { %p1287_p7 = scmp.ne.s32.totalorder %s1930_s1, %s1286_s24  ;;  %p1293_p11 = scmp.lt.u32.totalorder %s1286_s24, %s1930_s1 }
  0x18   : > { %p1289_p9 = pnand %p1618_p8, %p1287_p7 }
  0x1a   : > { %p1290_p10 = pneg %p1289_p9 }
  0x1c   : > { %p1295_p12 = pnand %p1293_p11, %p1290_p10 }
  0x1e   : > { %1298 = shalt.err (!%p1295_p12)
}
  0x1f   : > { %s1299_s13 = scalar_lea.vmem %s1591_s14, 1024  ;;  %p1307_p5 = scmp.lt.s32.totalorder %s1591_s14, %s1591_s14 }
  0x20   : > { %p1300_p13 = scmp.ne.s32.totalorder %s1591_s14, %s1299_s13  ;;  %p1308_p4 = scmp.lt.s32.totalorder %s1299_s13, %s1299_s13 }
  0x22   : > { %p1302_p0 = pnand %p1300_p13, %p1618_p8  ;;  %p1309_p7 = por %p1308_p4, %p1307_p5 }
  0x24   : > { %p1303_p2 = pneg %p1302_p0 }
  0x26   : > { %p1310_p9 = pnand %p1309_p7, %p1303_p2 }
  0x28   : > { %1313 = shalt.err (!%p1310_p9)
}
  0x29   : > { %s1507_s17 = smov 128   ;;  %s1508_s20 = smov 8  }
  0x2a   : > { %1217 = dma.hbm_to_vmem [thread:$0]  (!%p1602_p6), %s1930_s1, 1024, %s1591_s14, [#allocation6], %s1507_s17, %s1507_s17, %s1508_s20  }
  0x2b   : > { %s1314_s26 = scalar_lea.hbm %s1917_s5, 2048 }
  0x2c   : > { %p1315_p4 = scmp.ne.s32.totalorder %s1917_s5, %s1314_s26  ;;  %p1321_p12 = scmp.lt.u32.totalorder %s1314_s26, %s1917_s5 }
  0x2e   : > { %p1317_p10 = pnand %p1315_p4, %p1618_p8 }
  0x30   : > { %p1318_p11 = pneg %p1317_p10 }
  0x32   : > { %p1323_p13 = pnand %p1321_p12, %p1318_p11 }
  0x34   : > { %1326 = shalt.err (!%p1323_p13)
}
  0x35   : > { %s1327_s14 = scalar_lea.vmem %s1606_s18, 2048  ;;  %p1335_p7 = scmp.lt.s32.totalorder %s1606_s18, %s1606_s18 }
  0x36   : > { %p1328_p0 = scmp.ne.s32.totalorder %s1606_s18, %s1327_s14  ;;  %p1336_p9 = scmp.lt.s32.totalorder %s1327_s14, %s1327_s14 }
  0x38   : > { %p1330_p2 = pnand %p1328_p0, %p1618_p8  ;;  %p1337_p4 = por %p1336_p9, %p1335_p7 }
  0x3a   : > { %p1331_p5 = pneg %p1330_p2 }
  0x3c   : > { %p1338_p10 = pnand %p1337_p4, %p1331_p5 }
  0x3e   : > { %1341 = shalt.err (!%p1338_p10)
}
  0x3f   : > { %1223 = dma.hbm_to_vmem [thread:$0]  (!%p1602_p6), %s1917_s5, 2048, %s1606_s18, [#allocation9], %s1507_s17, %s1507_s17, %s1508_s20  }
  0x40   : > { %s1342_s25 = scalar_lea.hbm %s1915_s3, 2048 }
  0x41   : > { %p1343_p11 = scmp.ne.s32.totalorder %s1915_s3, %s1342_s25  ;;  %p1349_p0 = scmp.lt.u32.totalorder %s1342_s25, %s1915_s3 }
  0x43   : > { %p1345_p12 = pnand %p1343_p11, %p1618_p8 }
  0x45   : > { %p1346_p13 = pneg %p1345_p12 }
  0x47   : > { %p1351_p2 = pnand %p1349_p0, %p1346_p13 }
  0x49   : > { %1354 = shalt.err (!%p1351_p2)
}
  0x4a   : > { %s1355_s18 = scalar_lea.vmem %s1608_s21, 2048  ;;  %p1363_p4 = scmp.lt.s32.totalorder %s1608_s21, %s1608_s21 }
  0x4b   : > { %p1356_p5 = scmp.ne.s32.totalorder %s1608_s21, %s1355_s18  ;;  %p1364_p10 = scmp.lt.s32.totalorder %s1355_s18, %s1355_s18 }
  0x4d   : > { %p1358_p7 = pnand %p1356_p5, %p1618_p8  ;;  %p1365_p11 = por %p1364_p10, %p1363_p4 }
  0x4f   : > { %p1359_p9 = pneg %p1358_p7 }
  0x51   : > { %p1366_p12 = pnand %p1365_p11, %p1359_p9 }
  0x53   : > { %1369 = shalt.err (!%p1366_p12)
}
  0x54   : > { %1220 = dma.hbm_to_vmem [thread:$0]  (!%p1602_p6), %s1915_s3, 2048, %s1608_s21, [#allocation6], %s1507_s17, %s1507_s17, %s1508_s20  }
  0x55   : > { %s1509_s22 = smov [#allocation10]   ;;  %s1370_s26 = scalar_lea.hbm %s1919_s7, 2048 }
  0x56   : > { %s312_s23 = sshll.u32 %s1509_s22, 4  ;;  %p1371_p13 = scmp.ne.s32.totalorder %s1919_s7, %s1370_s26  ;;  %s313_s23 = int_to_ptr.vmem [resolvable:$true] %s312_s23 }
  0x57   : > { %p1377_p5 = scmp.lt.u32.totalorder %s1370_s26, %s1919_s7 }
  0x58   : > { %p1373_p0 = pnand %p1371_p13, %p1618_p8 }
  0x5a   : > { %p1374_p2 = pneg %p1373_p0 }
  0x5c   : > { %p1379_p7 = pnand %p1377_p5, %p1374_p2 }
  0x5e   : > { %1382 = shalt.err (!%p1379_p7)
}
  0x5f   : > { %s1383_s21 = scalar_lea.vmem %s313_s23, 2048  ;;  %p1391_p11 = scmp.lt.s32.totalorder %s313_s23, %s313_s23 }
  0x60   : > { %p1384_p9 = scmp.ne.s32.totalorder %s313_s23, %s1383_s21  ;;  %p1392_p12 = scmp.lt.s32.totalorder %s1383_s21, %s1383_s21 }
  0x62   : > { %p1386_p4 = pnand %p1384_p9, %p1618_p8  ;;  %p1393_p1 = por %p1392_p12, %p1391_p11 }
  0x64   : > { %p1387_p10 = pneg %p1386_p4 }
  0x66   : > { %p1394_p3 = pnand %p1393_p1, %p1387_p10 }
  0x68   : > { %1397 = shalt.err (!%p1394_p3)
}
  0x69   : > { %1226 = dma.hbm_to_vmem [thread:$0]  (!%p1602_p6), %s1919_s7, 2048, %s313_s23, [#allocation9], %s1507_s17, %s1507_s17, %s1508_s20  }
  0x6a   : > { %s901_s19 = sadd.s32 4294967294, %s1502_s12   ;;  %s1717_s27 = sadd.s32 1, %s1502_s12  }
  0x6b   : > { %s31_s22 = ssub.s32 %s1502_s12, %s1717_s27  ;;  %s34_s24 = sadd.s32 1, %s1498_s11 }
  0x6c   : > { %p32_p1 = scmp.eq.s32.totalorder %s31_s22, 0  ;;  %p41_p3 = scmp.ne.s32.totalorder %s1498_s11, %s1494_s10 }
  0x6d   : > { %p42_p8 = scmp.eq.s32.totalorder %s1502_s12, 0  ;;  %p47_p13 = scmp.ne.s32.totalorder %s1494_s10, %s1490_s30 }
  0x6e   : > { %s1728_s25 = scalar_select %p32_p1, %s1498_s11, %s34_s24  }
  0x6f   : > { %p1730_p0 = por %p42_p8, %p41_p3  ;;  %p1933_p2 = scmp.eq.s32.totalorder %s1586_s15, 0 }
  0x70   : > { %p239_p5 = scmp.eq.s32.totalorder %s1586_s15, 1  ;;  %p245_p7 = scmp.eq.s32.totalorder %s901_s19, 1 }
  0x71   : > { %p1736_p6 = por %p1933_p2, %p47_p13  ;;  %p1239_p9 = scmp.lt.s32.totalorder %s1502_s12, 2 }
  0x72   : > { %s329_s20 = sand.u32 1, %s1498_s11   ;;  %p1743_p4 = por %p239_p5, %p41_p3 }
  0x73   : > { %p1747_p10 = por %p245_p7, %p47_p13  ;;  %s908_s29 = sshll.u32 %s329_s20, 3 }
  0x74   : > { %s1935_s23 = scalar_select %p1743_p4, 1, 0 }
  0x75   : > { %s1936_s28 = scalar_select %p1747_p10, 1, 0 }
  0x76   : > { %s909_s13 = sshll.u32 %s1502_s12, 7  ;;  %s333_s9 = scalar_lea.vmem [#allocation2], %s908_s29 }
  0x77   : > { %s1755_s14 = scalar_lea.hbm %s1912_s0, %s909_s13  ;;  %s340_s19 = sshll.u32 %s333_s9, 4  ;;  %s1757_s19 = int_to_ptr.vmem [resolvable:$true] %s340_s19 }
  0x78   : > { %p1761_p11 = pnand %p1239_p9, %p1730_p0  ;;  %s330_s24 = scalar_lea.sflag [#allocation3], %s329_s20 }
  0x79   : > { %s1398_s1 = scalar_lea.hbm %s1755_s14, 128  ;;  %s1403_s18 = scalar_lea.hbm %s1912_s0, 256 }
  0x7a   : > { %p1399_p12 = scmp.ne.s32.totalorder %s1755_s14, %s1398_s1  ;;  %p1400_p1 = pneg %p1761_p11 }
  0x7b   : > { %p1404_p13 = scmp.lt.u32.totalorder %s1755_s14, %s1912_s0  ;;  %p1405_p0 = scmp.lt.u32.totalorder %s1403_s18, %s1398_s1 }
  0x7c   : > { %p1401_p3 = pnand %p1400_p1, %p1399_p12  ;;  %p1407_p5 = scmp.lt.u32.totalorder %s1398_s1, %s1755_s14 }
  0x7d   : > { %p1406_p2 = por %p1405_p0, %p1404_p13 }
  0x7e   : > { %p1402_p8 = pneg %p1401_p3 }
  0x7f   : > { %p1408_p7 = por %p1407_p5, %p1406_p2 }
  0x81   : > { %p1409_p9 = pnand %p1408_p7, %p1402_p8 }
  0x83   : > { %1412 = shalt.err (!%p1409_p9)
}
  0x84   : > { %s1413_s20 = scalar_lea.vmem %s1757_s19, 128  ;;  %s1510_s9 = smov [#allocation2]  }
  0x85   : > { %p1414_p12 = scmp.ne.s32.totalorder %s1757_s19, %s1413_s20  ;;  %s1418_s29 = sshll.u32 %s1510_s9, 4  ;;  %s1419_s29 = int_to_ptr.vmem [resolvable:$false] %s1418_s29 }
  0x86   : > { %s1420_s13 = scalar_lea.vmem %s1419_s29, 256  ;;  %p1421_p4 = scmp.lt.s32.totalorder %s1757_s19, %s1419_s29 }
  0x87   : > { %p1416_p3 = pnand %p1414_p12, %p1400_p1  ;;  %p1422_p13 = scmp.lt.s32.totalorder %s1420_s13, %s1413_s20 }
  0x89   : > { %p1417_p10 = pneg %p1416_p3  ;;  %p1423_p0 = por %p1422_p13, %p1421_p4 }
  0x8b   : > { %p1424_p2 = pnand %p1423_p0, %p1417_p10 }
  0x8d   : > { %1427 = shalt.err (!%p1424_p2)
}
  0x8e   : > { %1230 = dma.hbm_to_vmem [thread:$0]  (!%p1761_p11), %s1755_s14, 128, %s1757_s19, %s330_s24  }
  0x8f   : > { %p1938_p8 = scmp.ne.s32.totalorder %s1928_s16, 0 }
  0x90   : > { %s1793_s1 = sand.u32 (!%p1938_p8), 1, %s1494_s10  }
  0x91   : > { %349 = sbr.rel (%p1938_p8) target bundleno = 1053 (0x41d), region = 56  ;;  %s911_s18 = sshll.u32 (!%p1938_p8), %s1793_s1, 3 }
  0x92   : > { %s352_s26 = scalar_lea.sflag (!%p1938_p8), [#allocation3], %s1793_s1  ;;  %s1799_s21 = scalar_lea.vmem (!%p1938_p8), [#allocation2], %s911_s18 }
  0x98   : > { %1473 = dma.done.wait (%p1736_p6), %s352_s26, 128  }
  0x99   : > { %1475 = vsyncadd (%p1736_p6), %s352_s26, 4294967168  ;;  %p1939_p4 = scmp.eq.s32.totalorder %s1586_s15, 0 }
  0x9b   : > { %1477 = dma.done.wait (%p1939_p4), [#allocation6], 3072   ;;  %p1940_p10 = pmov %p1939_p4 }
  0x9c   : > { %p1941_p11 = pmov %p1939_p4 }
  0x9d   : > { %1479 = vsyncadd (%p1940_p10), [#allocation6], 4294964224 }
  0x9e   : > { %1481 = dma.done.wait (%p1941_p11), [#allocation9], 4096   ;;  %p1942_p1 = pmov %p1939_p4 }
  0x9f   : > { %v1511_v0 = vmov 0.0|0.0   ;;  %vm1512_vm0 = vmmov 0   ;;  %v1513_v1 = vmov 0.0   ;;  %v407_v2 = vld [vmem:[#allocation5] sm:$0xff]  ;;  %v408_v3 = vld [vmem:[#allocation5 + $0x8] sm:$0xff]  ;;  %v409_v4 = vld [vmem:[#allocation5 + $0x10] sm:$0xff] }
  0xa0   : > { %1483 = vsyncadd (%p1942_p1), [#allocation9], 4294963200  ;;  %1110 = vmatprep.subr.bf16.mxu0 %v1511_v0  ;;  %1002 = vmatprep.mubr.msk.f32.mxu0 %vm1512_vm0, %v1513_v1  ;;  %v1111_v5 = vpack.c.bf16 %v408_v3, %v407_v2  ;;  %v410_v6 = vld [vmem:[#allocation5 + $0x18] sm:$0xff]  ;;  %v497_v8 = vld [vmem:[#allocation7] sm:$0xff]  ;;  %vm422_vm1 = vcmask 523264   ;;  %s923_s29 = sshll.u32 %s1586_s15, 7 }
  0xa1   : > { %1122 = vmatprep.subr.bf16.mxu1 %v1511_v0  ;;  %1037 = vmatprep.mubr.msk.f32.mxu1 %vm1512_vm0, %v1513_v1  ;;  %v1114_v7 = vpack.c.bf16 %v410_v6, %v409_v4  ;;  %v498_v9 = vld [vmem:[#allocation7 + $0x8] sm:$0xff]  ;;  %v499_v10 = vld [vmem:[#allocation7 + $0x10] sm:$0xff]  ;;  %v411_v11 = vld [vmem:[#allocation5 + $0x20] sm:$0xff]  ;;  %s405_s13 = scalar_lea.vmem [#allocation11], %s911_s18  ;;  %s1943_s17 = sld [smem:[#allocation17_spill]] }
  0xa2   : > { %1112 = vmatpush3.bf16.msra.mxu0 %v1111_v5  ;;  %v412_v12 = vld [vmem:[#allocation5 + $0x28] sm:$0xff]  ;;  %v1123_v13 = vpack.c.bf16 %v498_v9, %v497_v8  ;;  %v500_v14 = vld [vmem:[#allocation7 + $0x18] sm:$0xff]  ;;  %v501_v17 = vld [vmem:[#allocation7 + $0x20] sm:$0xff]  ;;  %s793_s26 = sshll.u32 %s405_s13, 4  ;;  %s780_s19 = scalar_lea.sflag [#allocation4], %s1793_s1  ;;  %s1870_s26 = int_to_ptr.vmem [resolvable:$true] %s793_s26 }
  0xa3   : > { %1113 = vmatprep.subr.bf16.mxu0 %v1511_v0  ;;  %v1126_v15 = vpack.c.bf16 %v500_v14, %v499_v10  ;;  %v1117_v16 = vpack.c.bf16 %v412_v12, %v411_v11  ;;  %v502_v18 = vld [vmem:[#allocation7 + $0x28] sm:$0xff]  ;;  %v413_v19 = vld [vmem:[#allocation5 + $0x30] sm:$0xff]  ;;  %v414_v20 = vld [vmem:[#allocation5 + $0x38] sm:$0xff]  ;;  %s1428_s22 = scalar_lea.vmem %s1870_s26, 128  ;;  %p1944_p5 = scmp.ne.s32.totalorder %s1935_s23, 0 }
  0xa4   : > { %1124 = vmatpush3.bf16.msra.mxu1 %v1123_v13  ;;  %v1129_v21 = vpack.c.bf16 %v502_v18, %v501_v17  ;;  %v1120_v22 = vpack.c.bf16 %v414_v20, %v413_v19  ;;  %v503_v23 = vld [vmem:[#allocation7 + $0x30] sm:$0xff]  ;;  %v504_v24 = vld [vmem:[#allocation7 + $0x38] sm:$0xff]  ;;  %v505_v27 = vld [vmem:[#allocation7 + $0x40] sm:$0xff]  ;;  %p1429_p6 = scmp.ne.s32.totalorder %s1870_s26, %s1428_s22  ;;  %s1514_s15 = smov [#allocation11]  }
  0xa5   : > { %1125 = vmatprep.subr.bf16.mxu1 %v1511_v0  ;;  %v1132_v25 = vpack.c.bf16 %v504_v24, %v503_v23  ;;  %v406_v26 = vld [vmem:[%s1799_s21] sm:$0xff]  ;;  %v506_v28 = vld [vmem:[#allocation7 + $0x48] sm:$0xff]  ;;  %v509_v33 = vld [vmem:[#allocation7 + $0x60] sm:$0xff]  ;;  %s1432_s18 = sshll.u32 %s1514_s15, 4  ;;  %s1433_s18 = int_to_ptr.vmem [resolvable:$false] %s1432_s18 }
  0xa6   : > { %1115 = vmatpush3.bf16.msra.mxu0 %v1114_v7  ;;  %v1135_v29 = vpack.c.bf16 %v506_v28, %v505_v27  ;;  %v507_v30 = vld [vmem:[#allocation7 + $0x50] sm:$0xff]  ;;  %v508_v31 = vld [vmem:[#allocation7 + $0x58] sm:$0xff]  ;;  %v510_v34 = vld [vmem:[#allocation7 + $0x68] sm:$0xff]  ;;  %p1430_p7 = pnand %p1429_p6, %p1944_p5  ;;  %s1434_s24 = scalar_lea.vmem %s1433_s18, 256 }
  0xa7   : > { %1116 = vmatprep.subr.bf16.mxu0 %v1511_v0  ;;  %v1138_v32 = vpack.c.bf16 %v508_v31, %v507_v30  ;;  %v1141_v35 = vpack.c.bf16 %v510_v34, %v509_v33  ;;  %v511_v36 = vld [vmem:[#allocation7 + $0x70] sm:$0xff]  ;;  %v512_v37 = vld [vmem:[#allocation7 + $0x78] sm:$0xff]  ;;  %v591_v39 = vld [vmem:[#allocation8] sm:$0xff]  ;;  %s1868_s14 = scalar_lea.hbm %s1943_s17, %s923_s29  ;;  %p1435_p12 = scmp.lt.s32.totalorder %s1870_s26, %s1433_s18 }
  0xa8   : > { %1127 = vmatpush3.bf16.msra.mxu1 %v1126_v15  ;;  %v1144_v38 = vpack.c.bf16 %v512_v37, %v511_v36  ;;  %v592_v40 = vld [vmem:[#allocation8 + $0x8] sm:$0xff]  ;;  %v593_v41 = vld [vmem:[#allocation8 + $0x10] sm:$0xff]  ;;  %v594_v43 = vld [vmem:[#allocation8 + $0x18] sm:$0xff]  ;;  %p1431_p9 = pneg %p1430_p7  ;;  %p1436_p3 = scmp.lt.s32.totalorder %s1434_s24, %s1428_s22 }
  0xa9   : > { %1128 = vmatprep.subr.bf16.mxu1 %v1511_v0  ;;  %v1147_v42 = vpack.c.bf16 %v592_v40, %v591_v39  ;;  %v1150_v44 = vpack.c.bf16 %v594_v43, %v593_v41  ;;  %v595_v45 = vld [vmem:[#allocation8 + $0x20] sm:$0xff]  ;;  %v596_v46 = vld [vmem:[#allocation8 + $0x28] sm:$0xff]  ;;  %v597_v48 = vld [vmem:[#allocation8 + $0x30] sm:$0xff] }
  0xaa   : > { %1118 = vmatpush3.bf16.msra.mxu0 %v1117_v16  ;;  %v1153_v47 = vpack.c.bf16 %v596_v46, %v595_v45  ;;  %v598_v49 = vld [vmem:[#allocation8 + $0x38] sm:$0xff]  ;;  %v599_v51 = vld [vmem:[#allocation8 + $0x40] sm:$0xff]  ;;  %v600_v52 = vld [vmem:[#allocation8 + $0x48] sm:$0xff]  ;;  %p1437_p13 = por %p1436_p3, %p1435_p12 }
  0xab   : > { %1119 = vmatprep.subr.bf16.mxu0 %v1511_v0  ;;  %v1156_v50 = vpack.c.bf16 %v598_v49, %v597_v48  ;;  %v1159_v53 = vpack.c.bf16 %v600_v52, %v599_v51  ;;  %v601_v54 = vld [vmem:[#allocation8 + $0x50] sm:$0xff]  ;;  %v602_v55 = vld [vmem:[#allocation8 + $0x58] sm:$0xff]  ;;  %v603_v57 = vld [vmem:[#allocation8 + $0x60] sm:$0xff] }
  0xac   : > { %1130 = vmatpush3.bf16.msra.mxu1 %v1129_v21  ;;  %v1162_v56 = vpack.c.bf16 %v602_v55, %v601_v54  ;;  %v604_v58 = vld [vmem:[#allocation8 + $0x68] sm:$0xff]  ;;  %v917_v60 = vld [vmem:[%s1914_s2] ss:$0 sm:$0xff]  ;;  %v606_v4 = vld [vmem:[#allocation8 + $0x78] sm:$0xff]  ;;  %p1438_p0 = pnand %p1437_p13, %p1431_p9 }
  0xad   : > { %1131 = vmatprep.subr.bf16.mxu1 %v1511_v0  ;;  %v1165_v59 = vpack.c.bf16 %v604_v58, %v603_v57  ;;  %v605_v3 = vld [vmem:[#allocation8 + $0x70] sm:$0xff]  ;;  %v685_v6 = vld [vmem:[#allocation10] sm:$0xff]  ;;  %v686_v7 = vld [vmem:[#allocation10 + $0x8] sm:$0xff] }
  0xae   : > { %1121 = vmatpush3.bf16.msra.mxu0 %v1120_v22  ;;  %v1168_v5 = vpack.c.bf16 %v606_v4, %v605_v3  ;;  %v687_v8 = vld [vmem:[#allocation10 + $0x10] sm:$0xff]  ;;  %v1171_v9 = vpack.c.bf16 %v686_v7, %v685_v6  ;;  %v688_v10 = vld [vmem:[#allocation10 + $0x18] sm:$0xff]  ;;  %v689_v12 = vld [vmem:[#allocation10 + $0x20] sm:$0xff] }
  0xaf   : > { %1146 = vmatprep.subr.bf16.mxu0 %v1511_v0  ;;  %v1174_v11 = vpack.c.bf16 %v688_v10, %v687_v8  ;;  %v690_v13 = vld [vmem:[#allocation10 + $0x28] sm:$0xff]  ;;  %v692_v15 = vld [vmem:[#allocation10 + $0x38] sm:$0xff]  ;;  %v693_v17 = vld [vmem:[#allocation10 + $0x40] sm:$0xff] }
  0xb0   : > { %1133 = vmatpush3.bf16.msra.mxu1 %v1132_v25  ;;  %v1177_v14 = vpack.c.bf16 %v690_v13, %v689_v12  ;;  %v694_v18 = vld [vmem:[#allocation10 + $0x48] sm:$0xff]  ;;  %v695_v20 = vld [vmem:[#allocation10 + $0x50] sm:$0xff]  ;;  %v696_v21 = vld [vmem:[#allocation10 + $0x58] sm:$0xff] }
  0xb1   : > { %1003 = vmatmul.mubr.msk.f32.vlgmr.msra.gmra.mrb[0].mxu0 %vm422_vm1, %v406_v26  ;;  %1134 = vmatprep.subr.bf16.mxu1 %v1511_v0  ;;  %v1183_v19 = vpack.c.bf16 %v694_v18, %v693_v17  ;;  %v1186_v22 = vpack.c.bf16 %v696_v21, %v695_v20  ;;  %v697_v23 = vld [vmem:[#allocation10 + $0x60] sm:$0xff]  ;;  %v698_v24 = vld [vmem:[#allocation10 + $0x68] sm:$0xff]  ;;  %v919_v26 = vld [vmem:[%s1916_s4] ss:$0 sm:$0xff] }
  0xb2   : > { %1072 = vmatprep.mubr.msk.f32.mxu0 %vm1512_vm0, %v1513_v1  ;;  %1148 = vmatpush3.bf16.msra.mxu0 %v1147_v42  ;;  %v1189_v25 = vpack.c.bf16 %v698_v24, %v697_v23  ;;  %v699_v31 = vld [vmem:[#allocation10 + $0x70] sm:$0xff] }
  0xb3   : > { %1149 = vmatprep.subr.bf16.mxu0 %v1511_v0  ;;  %v920_v34 = vld [vmem:[%s1918_s6] ss:$0 sm:$0xff] }
  0xb4   : > { %1136 = vmatpush3.bf16.msra.mxu1 %v1135_v29 }
  0xb5   : > { %1137 = vmatprep.subr.bf16.mxu1 %v1511_v0 }
  0xb6   : > { %1151 = vmatpush3.bf16.msra.mxu0 %v1150_v44 }
  0xb7   : > { %1152 = vmatprep.subr.bf16.mxu0 %v1511_v0 }
  0xb8   : > { %1139 = vmatpush3.bf16.msra.mxu1 %v1138_v32  ;;  %v700_v32 = vld [vmem:[#allocation10 + $0x78] sm:$0xff] }
  0xb9   : > { %1140 = vmatprep.subr.bf16.mxu1 %v1511_v0  ;;  %v1192_v33 = vpack.c.bf16 %v700_v32, %v699_v31 }
  0xba   : > { %1154 = vmatpush3.bf16.msra.mxu0 %v1153_v47 }
  0xbb   : > { %1155 = vmatprep.subr.bf16.mxu0 %v1511_v0 }
  0xbc   : > { %1142 = vmatpush3.bf16.msra.mxu1 %v1141_v35 }
  0xbd   : > { %1143 = vmatprep.subr.bf16.mxu1 %v1511_v0 }
  0xbe   : > { %1157 = vmatpush3.bf16.msra.mxu0 %v1156_v50 }
  0xbf   : > { %1158 = vmatprep.subr.bf16.mxu0 %v1511_v0 }
  0xc0   : > { %1145 = vmatpush3.bf16.msra.mxu1 %v1144_v38  ;;  %v921_v38 = vld [vmem:[%s1920_s8] ss:$0 sm:$0xff] }
  0xc1   : > { %1170 = vmatprep.subr.bf16.mxu1 %v1511_v0 }
  0xc2   : > { %1160 = vmatpush3.bf16.msra.mxu0 %v1159_v53 }
  0xc3   : > { %1161 = vmatprep.subr.bf16.mxu0 %v1511_v0 }
  0xc6   : > { %1163 = vmatpush3.bf16.msra.mxu0 %v1162_v56 }
  0xc7   : > { %1164 = vmatprep.subr.bf16.mxu0 %v1511_v0 }
  0xca   : > { %1166 = vmatpush3.bf16.msra.mxu0 %v1165_v59 }
  0xcb   : > { %1167 = vmatprep.subr.bf16.mxu0 %v1511_v0 }
  0xce   : > { %1169 = vmatpush3.bf16.msra.mxu0 %v1168_v5 }
 0x184   : > { %v492_v61 = vpop.f32.mrb[0].mxu0 }
 0x185   : > { %v493_v62 = vadd.f32 %v917_v60, %v492_v61  ;;  %v1004_v63 = vpop.f32.mrb[1].mxu0 }
 0x187   : > { %v496_v2 = vmax.f32 %v493_v62, 0.0 }
 0x189   : > { %1038 = vmatmul.mubr.f32.vlgmr.msra.gmra.mrb[0].mxu1 %v496_v2 }
 0x18a   : > { %1107 = vmatprep.mubr.msk.f32.mxu1 %vm1512_vm0, %v1513_v1  ;;  %1172 = vmatpush3.bf16.msra.mxu1 %v1171_v9  ;;  %v691_v1 = vld [vmem:[#allocation10 + $0x30] sm:$0xff] }
 0x18b   : > { %1173 = vmatprep.subr.bf16.mxu1 %v1511_v0  ;;  %v1180_v16 = vpack.c.bf16 %v692_v15, %v691_v1 }
 0x18e   : > { %1175 = vmatpush3.bf16.msra.mxu1 %v1174_v11 }
 0x18f   : > { %1176 = vmatprep.subr.bf16.mxu1 %v1511_v0 }
 0x192   : > { %1178 = vmatpush3.bf16.msra.mxu1 %v1177_v14 }
 0x193   : > { %1179 = vmatprep.subr.bf16.mxu1 %v1511_v0 }
 0x196   : > { %1181 = vmatpush3.bf16.msra.mxu1 %v1180_v16 }
 0x197   : > { %1182 = vmatprep.subr.bf16.mxu1 %v1511_v0 }
 0x19a   : > { %1184 = vmatpush3.bf16.msra.mxu1 %v1183_v19 }
 0x19b   : > { %1185 = vmatprep.subr.bf16.mxu1 %v1511_v0 }
 0x19e   : > { %1187 = vmatpush3.bf16.msra.mxu1 %v1186_v22 }
 0x19f   : > { %1188 = vmatprep.subr.bf16.mxu1 %v1511_v0 }
 0x1a2   : > { %1190 = vmatpush3.bf16.msra.mxu1 %v1189_v25 }
 0x1a3   : > { %1191 = vmatprep.subr.bf16.mxu1 %v1511_v0 }
 0x1a6   : > { %1193 = vmatpush3.bf16.msra.mxu1 %v1192_v33 }
 0x25c   : > { %v586_v27 = vpop.f32.mrb[0].mxu1 }
 0x25d   : > { %v587_v28 = vadd.f32 %v919_v26, %v586_v27  ;;  %v1039_v29 = vpop.f32.mrb[1].mxu1 }
 0x25f   : > { %v590_v30 = vmax.f32 %v587_v28, 0.0 }
 0x261   : > { %1073 = vmatmul.mubr.f32.vlgmr.msra.gmra.mrb[2].mxu0 %v590_v30 }
 0x334   : > { %v680_v0 = vpop.f32.mrb[2].mxu0 }
 0x335   : > { %v681_v35 = vadd.f32 %v920_v34, %v680_v0  ;;  %v1074_v36 = vpop.f32.mrb[3].mxu0 }
 0x337   : > { %v684_v37 = vmax.f32 %v681_v35, 0.0 }
 0x339   : > { %1108 = vmatmul.mubr.f32.vlgmr.msra.gmra.mrb[2].mxu1 %v684_v37 }
 0x40c   : > { %v774_v39 = vpop.f32.mrb[2].mxu1 }
 0x40d   : > { %v775_v40 = vadd.f32 %v921_v38, %v774_v39  ;;  %v1109_v41 = vpop.f32.mrb[3].mxu1 }
 0x40f   : > { %778 = vst [vmem:[%s405_s13] sm:$0xff] %v775_v40 }
 0x410   : > { %1441 = shalt.err (!%p1438_p0)
}
 0x411   : > { %s1442_s1 = scalar_lea.hbm %s1868_s14, 128  ;;  %s1446_s29 = scalar_lea.hbm %s1943_s17, 256 }
 0x412   : > { %p1443_p2 = scmp.ne.s32.totalorder %s1868_s14, %s1442_s1  ;;  %p1447_p10 = scmp.lt.u32.totalorder %s1868_s14, %s1943_s17 }
 0x413   : > { %p1448_p11 = scmp.lt.u32.totalorder %s1446_s29, %s1442_s1  ;;  %p1450_p6 = scmp.lt.u32.totalorder %s1442_s1, %s1868_s14 }
 0x414   : > { %p1444_p8 = pnand %p1443_p2, %p1944_p5 }
 0x415   : > { %p1449_p1 = por %p1448_p11, %p1447_p10 }
 0x416   : > { %p1445_p4 = pneg %p1444_p8 }
 0x417   : > { %p1451_p7 = por %p1450_p6, %p1449_p1 }
 0x419   : > { %p1452_p9 = pnand %p1451_p7, %p1445_p4 }
 0x41b   : > { %1455 = shalt.err (!%p1452_p9)
}
 0x41c   : > { %1212 = dma.vmem_to_hbm [thread:$0]  (%p1944_p5), %s1870_s26, 128, %s1868_s14, %s780_s19  }
 0x41d PF: > { %s805_s16 = sand.u32 1, %s1490_s30   ;;  %p1945_p12 = scmp.ne.s32.totalorder %s1936_s28, 0 }
 0x41e   : > { %p1946_p3 = scmp.ge.s32.totalorder %s1502_s12, 2  ;;  %s806_s22 = scalar_lea.sflag [#allocation4], %s805_s16 }
 0x420   : > { %p1232_p13 = pnand %p1946_p3, %p1945_p12 }
 0x422   : > { %1485 = dma.done.wait (!%p1232_p13), %s806_s22, 128  }
 0x423   : > { %1487 = vsyncadd (!%p1232_p13), %s806_s22, 4294967168  ;;  %p24_p0 = scmp.ge.s32.totalorder %s1717_s27, 4   ;;  %s1947_s30 = smov %s1494_s10 }
 0x424   : > { %s1948_s10 = smov %s1498_s11  ;;  %s1949_s11 = smov %s1728_s25 }
 0x425   : > { %s1950_s12 = smov %s1717_s27  ;;  %26 = sbr.rel (!%p24_p0) target bundleno = 10 (0xa), region = 117 }
 0x42c   :  { %811 = vsyncpa [#allocation3], 1 }
 0x42d   :  { %813 = vsyncpa [#allocation3 + $0x1], 1 }
 0x42e   :  { %814 = vsyncpa [#allocation6], 1 }
 0x42f   :  { %815 = vsyncpa [#allocation9], 1 }
 0x430   :  { %816 = vsyncpa [#allocation4], 1 }
 0x431   :  { %818 = vsyncpa [#allocation4 + $0x1], 1 }

</bundles_post_ra>
